<compile_context>
chip_gen: v7x
topology: tpu7x:2x2x1
jax: 0.10.0
libtpu: 0.0.40
codegen_flags: <defaults>
</compile_context>

<pallas_src>
import functools
import math

import jax
import jax.numpy as jnp
from jax.experimental import pallas as pl
from jax.experimental.pallas import tpu as pltpu


def _flash_attn_kernel(q_ref, k_ref, v_ref, o_ref, m_sc, l_sc, acc_sc, *,
                       tq, tk, seq_len, masking, pad_needed):
    # q_ref: (H, tq, Dh)   scaled queries, compute dtype (bf16 for f32 callers)
    # k_ref/v_ref: (H, tk, Dh)
    # o_ref: (H, tq, Dh)
    # m_sc/l_sc: (H, tq, 1) f32 online-softmax running max / denominator
    # acc_sc:    (H, tq, Dh) f32 accumulator
    qi = pl.program_id(1)
    ki = pl.program_id(2)

    @pl.when(ki == 0)
    def _init():
        m_sc[...] = jnp.full(m_sc.shape, -jnp.inf, m_sc.dtype)
        l_sc[...] = jnp.zeros(l_sc.shape, l_sc.dtype)
        acc_sc[...] = jnp.zeros(acc_sc.shape, acc_sc.dtype)

    def _block_update():
        q = q_ref[...]
        k = k_ref[...]
        v = v_ref[...]
        # batched-over-heads score matmul; f32 accumulation on the MXU
        s = jnp.einsum('hqd,hkd->hqk', q, k,
                       preferred_element_type=jnp.float32)       # (H, tq, tk)

        if masking or pad_needed:
            col = ki * tk + jax.lax.broadcasted_iota(jnp.int32, (tq, tk), 1)
            bad = jnp.zeros((tq, tk), jnp.bool_)
            if masking:
                row = qi * tq + jax.lax.broadcasted_iota(jnp.int32, (tq, tk), 0)
                bad = jnp.logical_or(bad, col > row)
            if pad_needed:
                bad = jnp.logical_or(bad, col >= seq_len)
            # Large finite negative (not -inf): no inf-inf NaN risk.
            # NOTE: correct because kv tile 0 is always processed first and
            # always contains at least one unmasked column per query row
            # (column 0 is real and 0 <= row), so the running max never equals
            # the mask value.  Keep this invariant if the iteration order or
            # the skip condition ever changes.
            s = jnp.where(bad[None, :, :], jnp.float32(-1e30), s)

        m_prev = m_sc[...]
        m_new = jnp.maximum(m_prev, s.max(axis=-1, keepdims=True))
        # exp stays f32 (EUP); v6e/v7x could use bf16 exp for ~2x EUP rate if
        # accuracy allows — kept f32 here for accuracy and v5e compatibility.
        alpha = jnp.exp(m_prev - m_new)
        p = jnp.exp(s - m_new)                                    # (H, tq, tk)
        l_sc[...] = alpha * l_sc[...] + p.sum(axis=-1, keepdims=True)
        acc_sc[...] = alpha * acc_sc[...] + jnp.einsum(
            'hqk,hkd->hqd', p.astype(v.dtype), v,
            preferred_element_type=jnp.float32)
        m_sc[...] = m_new

    conds = []
    if masking:
        # skip kv tiles that lie entirely above the causal diagonal
        conds.append(ki * tk <= qi * tq + (tq - 1))
    if pad_needed:
        # skip kv tiles that lie entirely in the sequence padding
        conds.append(ki * tk < seq_len)
    if conds:
        pl.when(functools.reduce(jnp.logical_and, conds))(_block_update)
    else:
        _block_update()

    @pl.when(ki == pl.num_programs(2) - 1)
    def _finalize():
        out = acc_sc[...] * pl.reciprocal(l_sc[...], approx=True)
        o_ref[...] = out.astype(o_ref.dtype)


def _round_up(x, m):
    return ((x + m - 1) // m) * m


def _pick_tile(n, target=256):
    # 256 fills the 256-wide MXUs (v6e/v7x) and amortizes per-grid-step
    # overhead; for short sequences round up to a sublane-friendly multiple
    # of 16 (bf16 packing) and pad instead of falling back to one giant tile.
    if n >= target:
        return target
    return _round_up(n, 16)


def _default_vmem_limit_bytes():
    try:
        kind = jax.devices()[0].device_kind.lower()
    except Exception:
        kind = ""
    if "v7" in kind:
        return 48 * 1024 * 1024      # v7x: 64 MiB physical VMEM per TC
    if any(t in kind for t in ("v4", "v5", "v6")):
        return 100 * 1024 * 1024     # 128 MiB physical VMEM
    return 48 * 1024 * 1024          # conservative default


def flash_attention(q, k, v, *, masking=False, tq=None, tk=None,
                    out_dtype=None, vmem_limit_bytes=None):
    """Pure flash-attention core.

    q/k/v: (B, H, N, Dh); q must already include the softmax scale.
    Returns (B, H, N, Dh) in `out_dtype` (default: q.dtype).
    """
    b, h, n, dh = q.shape
    if out_dtype is None:
        out_dtype = q.dtype
    if tq is None:
        tq = _pick_tile(n)
    if tk is None:
        tk = _pick_tile(n)
    if vmem_limit_bytes is None:
        vmem_limit_bytes = _default_vmem_limit_bytes()

    n_pad = _round_up(n, tq * tk // math.gcd(tq, tk))
    pad_needed = n_pad != n
    if pad_needed:
        pad = [(0, 0), (0, 0), (0, n_pad - n), (0, 0)]
        q, k, v = (jnp.pad(t, pad) for t in (q, k, v))

    grid = (b, n_pad // tq, n_pad // tk)
    last_real_kv = (n - 1) // tk  # last kv block containing real (unpadded) keys

    def q_index_map(bb, qi, ki):
        return (bb, 0, qi, 0)

    def kv_index_map(bb, qi, ki):
        kk = ki
        if masking:
            # clamp to the last kv block this q tile needs -> repeated block
            # index for above-diagonal tiles -> no DMA issued for them
            kk = jnp.minimum(kk, (qi * tq + (tq - 1)) // tk)
        if pad_needed:
            kk = jnp.minimum(kk, last_real_kv)
        return (bb, 0, kk, 0)

    kernel = functools.partial(
        _flash_attn_kernel, tq=tq, tk=tk, seq_len=n, masking=masking,
        pad_needed=pad_needed)

    def _nbytes(t):
        return int(t.size) * int(t.dtype.itemsize)

    cost = pl.CostEstimate(
        flops=4 * b * h * n_pad * n_pad * dh,
        transcendentals=b * h * n_pad * n_pad,
        bytes_accessed=_nbytes(q) + _nbytes(k) + _nbytes(v)
        + b * h * n_pad * dh * jnp.dtype(out_dtype).itemsize)

    out = pl.pallas_call(
        kernel,
        out_shape=jax.ShapeDtypeStruct((b, h, n_pad, dh), out_dtype),
        grid_spec=pltpu.PrefetchScalarGridSpec(
            num_scalar_prefetch=0,
            grid=grid,
            in_specs=[
                pl.BlockSpec((pl.Squeezed(), h, tq, dh), q_index_map),   # q
                pl.BlockSpec((pl.Squeezed(), h, tk, dh), kv_index_map),  # k
                pl.BlockSpec((pl.Squeezed(), h, tk, dh), kv_index_map),  # v
            ],
            out_specs=pl.BlockSpec((pl.Squeezed(), h, tq, dh), q_index_map),
            scratch_shapes=[
                pltpu.VMEM((h, tq, 1), jnp.float32),    # m (running max)
                pltpu.VMEM((h, tq, 1), jnp.float32),    # l (denominator)
                pltpu.VMEM((h, tq, dh), jnp.float32),   # acc
            ],
        ),
        compiler_params=pltpu.CompilerParams(
            dimension_semantics=("parallel", "parallel", "arbitrary"),
            vmem_limit_bytes=vmem_limit_bytes),
        cost_estimate=cost,
    )(q, k, v)

    if pad_needed:
        out = out[:, :, :n, :]
    return out


def attention_pallas(x, w_qkv, w_out, *, heads, dim_head, masking=False,
                     tq=None, tk=None):
    """Forward pass equivalent to the PyTorch `Attention` module (eval mode)."""
    b, n, d = x.shape
    inner = heads * dim_head
    assert w_qkv.shape == (d, 3 * inner)
    assert w_out.shape == (inner, d)
    scale = float(dim_head) ** -0.5

    # Q/K/V projections hoisted out of the flash kernel (plain XLA GEMMs) —
    # avoids recomputing K/V for every q tile and hands the kernel tiles that
    # are already in (B, H, N, Dh) layout (no in-kernel relayouts).
    w_q, w_k, w_v = jnp.split(w_qkv, 3, axis=-1)

    def project(w):
        y = jnp.einsum('bnd,de->bne', x, w)
        return jnp.transpose(y.reshape(b, n, heads, dim_head), (0, 2, 1, 3))

    q = project(w_q) * scale        # fold the softmax scale into q once
    k = project(w_k)
    v = project(w_v)

    # bf16 MXU operands for f32 callers (accumulation stays f32 in-kernel).
    compute_dtype = jnp.bfloat16 if x.dtype == jnp.float32 else x.dtype
    q, k, v = (t.astype(compute_dtype) for t in (q, k, v))

    out = flash_attention(q, k, v, masking=masking, tq=tq, tk=tk,
                          out_dtype=x.dtype)

    # 'b h n d -> b n (h d)' + output projection (XLA GEMM).
    out = jnp.transpose(out, (0, 2, 1, 3)).reshape(b, n, inner)
    # TODO(synk): nn.Dropout is identity in eval mode; add a dropout mask if a
    # training-mode forward is ever needed.
    return jnp.einsum('bne,ed->bnd', out, w_out)


def attention_reference(x, w_qkv, w_out, *, heads, dim_head, masking=False):
    """Pure-JAX reference mirroring the PyTorch forward."""
    b, n, d = x.shape
    inner = heads * dim_head
    scale = float(dim_head) ** -0.5
    qkv = jnp.einsum('bnd,de->bne', x, w_qkv)
    q, k, v = jnp.split(qkv, 3, axis=-1)

    def to_heads(t):
        return jnp.transpose(t.reshape(b, n, heads, dim_head), (0, 2, 1, 3))

    q, k, v = map(to_heads, (q, k, v))
    dots = jnp.einsum('bhid,bhjd->bhij', q, k) * scale
    if masking:
        mask = jnp.triu(jnp.full((n, n), -jnp.inf), k=1)
        dots = dots + mask[None, None]
    attn = jax.nn.softmax(dots, axis=-1)
    out = jnp.einsum('bhij,bhjd->bhid', attn, v)
    out = jnp.transpose(out, (0, 2, 1, 3)).reshape(b, n, inner)
    return jnp.einsum('bne,ed->bnd', out, w_out)


if __name__ == "__main__":
    B, N, DIM = 2, 8, 32
    HEADS, DIM_HEAD = 4, 8
    INNER = HEADS * DIM_HEAD

    key = jax.random.PRNGKey(0)
    kx, kq, ko, kx2 = jax.random.split(key, 4)
    x = jax.random.normal(kx, (B, N, DIM), dtype=jnp.float32)
    # deterministic parameter init (nn.Linear-like scale)
    w_qkv = jax.random.normal(kq, (DIM, 3 * INNER), dtype=jnp.float32) * (DIM ** -0.5)
    w_out = jax.random.normal(ko, (INNER, DIM), dtype=jnp.float32) * (INNER ** -0.5)

    # 1) short sequence (N=8, padded to a 16-wide tile), unmasked + causal
    for mask_flag in (False, True):
        y = attention_pallas(x, w_qkv, w_out, heads=HEADS, dim_head=DIM_HEAD,
                             masking=mask_flag)
        y = jax.block_until_ready(y)
        y_ref = attention_reference(x, w_qkv, w_out, heads=HEADS,
                                    dim_head=DIM_HEAD, masking=mask_flag)
        assert jnp.allclose(y, y_ref, atol=2e-2, rtol=2e-2), \
            f"mismatch vs reference (masking={mask_flag})"

    # 2) multi-tile case exercising online-softmax accumulation, the causal
    #    tile skip and the clamped kv index_map: N=32, tq=tk=8 -> grid (2,4,4)
    N2 = 32
    x2 = jax.random.normal(kx2, (B, N2, DIM), dtype=jnp.float32)
    for mask_flag in (False, True):
        y2 = attention_pallas(x2, w_qkv, w_out, heads=HEADS, dim_head=DIM_HEAD,
                              masking=mask_flag, tq=8, tk=8)
        y2 = jax.block_until_ready(y2)
        y2_ref = attention_reference(x2, w_qkv, w_out, heads=HEADS,
                                     dim_head=DIM_HEAD, masking=mask_flag)
        assert jnp.allclose(y2, y2_ref, atol=2e-2, rtol=2e-2), \
            f"mismatch vs reference, tiled (masking={mask_flag})"

    # 3) bf16 inputs exercise the native bf16 MXU path end-to-end
    y_bf16 = attention_pallas(x.astype(jnp.bfloat16), w_qkv.astype(jnp.bfloat16),
                              w_out.astype(jnp.bfloat16),
                              heads=HEADS, dim_head=DIM_HEAD, masking=True)
    jax.block_until_ready(y_bf16)

    print("KERNEL_OK")
</pallas_src>

<mosaic_0001>
module attributes {stable_mosaic.version = 11 : i64} {
  func.func @_flash_attn_kernel(%arg0: i32, %arg1: i32, %arg2: i32, %arg3: memref<1x4x16x8xbf16, #tpu.memory_space<vmem>>, %arg4: memref<1x4x16x8xbf16, #tpu.memory_space<vmem>>, %arg5: memref<1x4x16x8xbf16, #tpu.memory_space<vmem>>, %arg6: memref<1x4x16x8xf32, #tpu.memory_space<vmem>>, %arg7: memref<4x16x1xf32, #tpu.memory_space<vmem>>, %arg8: memref<4x16x1xf32, #tpu.memory_space<vmem>>, %arg9: memref<4x16x8xf32, #tpu.memory_space<vmem>>) attributes {dimension_semantics = [#tpu.dimension_semantics<parallel>, #tpu.dimension_semantics<parallel>, #tpu.dimension_semantics<arbitrary>], iteration_bounds = array<i64: 2, 1, 1>, scalar_prefetch = 0 : i64, scratch_operands = 3 : i64, tpu.core_type = #tpu.core_type<tc>, window_params = [{transform_indices = @transform_0, window_bounds = array<i64: 1, 4, 16, 8>}, {transform_indices = @transform_1, window_bounds = array<i64: 1, 4, 16, 8>}, {transform_indices = @transform_2, window_bounds = array<i64: 1, 4, 16, 8>}, {transform_indices = @transform_3, window_bounds = array<i64: 1, 4, 16, 8>}]} {
    %c0_i32 = arith.constant 0 : i32
    %0 = arith.cmpi eq, %arg2, %c0_i32 : i32
    %1 = arith.extui %0 : i1 to i32
    %c0_i32_0 = arith.constant 0 : i32
    %2 = arith.cmpi ne, %1, %c0_i32_0 : i32
    scf.if %2 {
      %cst = arith.constant 0xFF800000 : f32
      %10 = vector.broadcast %cst : f32 to vector<4x16x1xf32>
      %c0 = arith.constant 0 : index
      %c0_4 = arith.constant 0 : index
      %c0_5 = arith.constant 0 : index
      %11 = vector.load %arg7[%c0, %c0_4, %c0_5] : memref<4x16x1xf32, #tpu.memory_space<vmem>>, vector<4x16x1xf32>
      tpu.vector_store %arg7[%c0, %c0_4, %c0_5], %10 {strides = array<i32>} : memref<4x16x1xf32, #tpu.memory_space<vmem>>, vector<4x16x1xf32>,
      %cst_6 = arith.constant 0.000000e+00 : f32
      %12 = vector.broadcast %cst_6 : f32 to vector<4x16x1xf32>
      %c0_7 = arith.constant 0 : index
      %c0_8 = arith.constant 0 : index
      %c0_9 = arith.constant 0 : index
      %13 = vector.load %arg8[%c0_7, %c0_8, %c0_9] : memref<4x16x1xf32, #tpu.memory_space<vmem>>, vector<4x16x1xf32>
      tpu.vector_store %arg8[%c0_7, %c0_8, %c0_9], %12 {strides = array<i32>} : memref<4x16x1xf32, #tpu.memory_space<vmem>>, vector<4x16x1xf32>,
      %cst_10 = arith.constant 0.000000e+00 : f32
      %14 = vector.broadcast %cst_10 : f32 to vector<4x16x8xf32>
      %c0_11 = arith.constant 0 : index
      %c0_12 = arith.constant 0 : index
      %c0_13 = arith.constant 0 : index
      %15 = vector.load %arg9[%c0_11, %c0_12, %c0_13] : memref<4x16x8xf32, #tpu.memory_space<vmem>>, vector<4x16x8xf32>
      tpu.vector_store %arg9[%c0_11, %c0_12, %c0_13], %14 {strides = array<i32>} : memref<4x16x8xf32, #tpu.memory_space<vmem>>, vector<4x16x8xf32>,
    } else {
    }
    %c16_i32 = arith.constant 16 : i32
    %3 = arith.muli %arg2, %c16_i32 : i32
    %c8_i32 = arith.constant 8 : i32
    %4 = arith.cmpi slt, %3, %c8_i32 : i32
    %5 = arith.extui %4 : i1 to i32
    %c0_i32_1 = arith.constant 0 : i32
    %6 = arith.cmpi ne, %5, %c0_i32_1 : i32
    scf.if %6 {
      %c0 = arith.constant 0 : index
      %c0_4 = arith.constant 0 : index
      %c0_5 = arith.constant 0 : index
      %c0_6 = arith.constant 0 : index
      %10 = vector.load %arg3[%c0, %c0_4, %c0_5, %c0_6] : memref<1x4x16x8xbf16, #tpu.memory_space<vmem>>, vector<1x4x16x8xbf16>
      %11 = vector.shape_cast %10 : vector<1x4x16x8xbf16> to vector<4x16x8xbf16>
      %c0_7 = arith.constant 0 : index
      %c0_8 = arith.constant 0 : index
      %c0_9 = arith.constant 0 : index
      %c0_10 = arith.constant 0 : index
      %12 = vector.load %arg4[%c0_7, %c0_8, %c0_9, %c0_10] : memref<1x4x16x8xbf16, #tpu.memory_space<vmem>>, vector<1x4x16x8xbf16>
      %13 = vector.shape_cast %12 : vector<1x4x16x8xbf16> to vector<4x16x8xbf16>
      %c0_11 = arith.constant 0 : index
      %c0_12 = arith.constant 0 : index
      %c0_13 = arith.constant 0 : index
      %c0_14 = arith.constant 0 : index
      %14 = vector.load %arg5[%c0_11, %c0_12, %c0_13, %c0_14] : memref<1x4x16x8xbf16, #tpu.memory_space<vmem>>, vector<1x4x16x8xbf16>
      %15 = vector.shape_cast %14 : vector<1x4x16x8xbf16> to vector<4x16x8xbf16>
      "tpu.trace_start"() <{level = 10 : i32, message = "hqd,hkd->hqk"}> : () -> ()
      %cst = arith.constant dense<0.000000e+00> : vector<4x16x16xf32>
      %16 = tpu.matmul %11, %13, %cst {dimension_numbers = #tpu.dot_dimension_numbers<[2], [2], [1], [1], [0, 0, 0, 1, 1, 1], [0], [0]>} : vector<4x16x8xbf16>, vector<4x16x8xbf16>, vector<4x16x16xf32> -> vector<4x16x16xf32>
      "tpu.trace_stop"() : () -> ()
      %c16_i32_15 = arith.constant 16 : i32
      %17 = arith.muli %arg2, %c16_i32_15 : i32
      %18 = tpu.iota {dimensions = array<i32: 1>} : vector<16x16xi32>
      %19 = vector.broadcast %17 : i32 to vector<16x16xi32>
      %20 = arith.addi %19, %18 : vector<16x16xi32>
      %false = arith.constant false
      %21 = vector.broadcast %false : i1 to vector<16x16xi1>
      %c8_i32_16 = arith.constant 8 : i32
      %22 = vector.broadcast %c8_i32_16 : i32 to vector<16x16xi32>
      %23 = arith.cmpi sge, %20, %22 : vector<16x16xi32>
      %24 = arith.ori %21, %23 : vector<16x16xi1>
      %25 = vector.shape_cast %24 : vector<16x16xi1> to vector<1x16x16xi1>
      %cst_17 = arith.constant -1.000000e+30 : f32
      %26 = vector.shape_cast %25 : vector<1x16x16xi1> to vector<1x16x16xi1>
      %27 = vector.broadcast %26 : vector<1x16x16xi1> to vector<4x16x16xi1>
      %28 = vector.broadcast %cst_17 : f32 to vector<4x16x16xf32>
      %29 = arith.select %27, %28, %16 : vector<4x16x16xi1>, vector<4x16x16xf32>
      %c0_18 = arith.constant 0 : index
      %c0_19 = arith.constant 0 : index
      %c0_20 = arith.constant 0 : index
      %30 = vector.load %arg7[%c0_18, %c0_19, %c0_20] : memref<4x16x1xf32, #tpu.memory_space<vmem>>, vector<4x16x1xf32>
      %cst_21 = arith.constant dense<0xFF800000> : vector<4x16xf32>
      %31 = vector.multi_reduction <maximumf>, %29, %cst_21 [2] : vector<4x16x16xf32> to vector<4x16xf32>
      %32 = vector.shape_cast %31 : vector<4x16xf32> to vector<4x16x1xf32>
      %33 = arith.maximumf %30, %32 : vector<4x16x1xf32>
      %34 = arith.subf %30, %33 : vector<4x16x1xf32>
      %35 = math.exp %34 : vector<4x16x1xf32>
      %36 = vector.broadcast %33 : vector<4x16x1xf32> to vector<4x16x16xf32>
      %37 = arith.subf %29, %36 : vector<4x16x16xf32>
      %38 = math.exp %37 : vector<4x16x16xf32>
      %c0_22 = arith.constant 0 : index
      %c0_23 = arith.constant 0 : index
      %c0_24 = arith.constant 0 : index
      %39 = vector.load %arg8[%c0_22, %c0_23, %c0_24] : memref<4x16x1xf32, #tpu.memory_space<vmem>>, vector<4x16x1xf32>
      %40 = arith.mulf %35, %39 : vector<4x16x1xf32>
      %cst_25 = arith.constant dense<0.000000e+00> : vector<4x16xf32>
      %41 = vector.multi_reduction <add>, %38, %cst_25 [2] : vector<4x16x16xf32> to vector<4x16xf32>
      %42 = vector.shape_cast %41 : vector<4x16xf32> to vector<4x16x1xf32>
      %43 = arith.addf %40, %42 : vector<4x16x1xf32>
      %c0_26 = arith.constant 0 : index
      %c0_27 = arith.constant 0 : index
      %c0_28 = arith.constant 0 : index
      %44 = vector.load %arg8[%c0_26, %c0_27, %c0_28] : memref<4x16x1xf32, #tpu.memory_space<vmem>>, vector<4x16x1xf32>
      tpu.vector_store %arg8[%c0_26, %c0_27, %c0_28], %43 {strides = array<i32>} : memref<4x16x1xf32, #tpu.memory_space<vmem>>, vector<4x16x1xf32>,
      %c0_29 = arith.constant 0 : index
      %c0_30 = arith.constant 0 : index
      %c0_31 = arith.constant 0 : index
      %45 = vector.load %arg9[%c0_29, %c0_30, %c0_31] : memref<4x16x8xf32, #tpu.memory_space<vmem>>, vector<4x16x8xf32>
      %46 = vector.broadcast %35 : vector<4x16x1xf32> to vector<4x16x8xf32>
      %47 = arith.mulf %46, %45 : vector<4x16x8xf32>
      %48 = arith.truncf %38 : vector<4x16x16xf32> to vector<4x16x16xbf16>
      "tpu.trace_start"() <{level = 10 : i32, message = "hqk,hkd->hqd"}> : () -> ()
      %cst_32 = arith.constant dense<0.000000e+00> : vector<4x16x8xf32>
      %49 = tpu.matmul %48, %15, %cst_32 {dimension_numbers = #tpu.dot_dimension_numbers<[2], [1], [1], [2], [0, 0, 0, 1, 1, 2], [0], [0]>} : vector<4x16x16xbf16>, vector<4x16x8xbf16>, vector<4x16x8xf32> -> vector<4x16x8xf32>
      "tpu.trace_stop"() : () -> ()
      %50 = arith.addf %47, %49 : vector<4x16x8xf32>
      %c0_33 = arith.constant 0 : index
      %c0_34 = arith.constant 0 : index
      %c0_35 = arith.constant 0 : index
      %51 = vector.load %arg9[%c0_33, %c0_34, %c0_35] : memref<4x16x8xf32, #tpu.memory_space<vmem>>, vector<4x16x8xf32>
      tpu.vector_store %arg9[%c0_33, %c0_34, %c0_35], %50 {strides = array<i32>} : memref<4x16x8xf32, #tpu.memory_space<vmem>>, vector<4x16x8xf32>,
      %c0_36 = arith.constant 0 : index
      %c0_37 = arith.constant 0 : index
      %c0_38 = arith.constant 0 : index
      %52 = vector.load %arg7[%c0_36, %c0_37, %c0_38] : memref<4x16x1xf32, #tpu.memory_space<vmem>>, vector<4x16x1xf32>
      tpu.vector_store %arg7[%c0_36, %c0_37, %c0_38], %33 {strides = array<i32>} : memref<4x16x1xf32, #tpu.memory_space<vmem>>, vector<4x16x1xf32>,
    } else {
    }
    %c0_i32_2 = arith.constant 0 : i32
    %7 = arith.cmpi eq, %arg2, %c0_i32_2 : i32
    %8 = arith.extui %7 : i1 to i32
    %c0_i32_3 = arith.constant 0 : i32
    %9 = arith.cmpi ne, %8, %c0_i32_3 : i32
    scf.if %9 {
      %c0 = arith.constant 0 : index
      %c0_4 = arith.constant 0 : index
      %c0_5 = arith.constant 0 : index
      %10 = vector.load %arg9[%c0, %c0_4, %c0_5] : memref<4x16x8xf32, #tpu.memory_space<vmem>>, vector<4x16x8xf32>
      %c0_6 = arith.constant 0 : index
      %c0_7 = arith.constant 0 : index
      %c0_8 = arith.constant 0 : index
      %11 = vector.load %arg8[%c0_6, %c0_7, %c0_8] : memref<4x16x1xf32, #tpu.memory_space<vmem>>, vector<4x16x1xf32>
      %12 = tpu.reciprocal %11 {approx = true} : vector<4x16x1xf32> -> vector<4x16x1xf32>
      %13 = vector.broadcast %12 : vector<4x16x1xf32> to vector<4x16x8xf32>
      %14 = arith.mulf %10, %13 : vector<4x16x8xf32>
      %c0_9 = arith.constant 0 : index
      %c0_10 = arith.constant 0 : index
      %c0_11 = arith.constant 0 : index
      %c0_12 = arith.constant 0 : index
      %15 = vector.load %arg6[%c0_9, %c0_10, %c0_11, %c0_12] : memref<1x4x16x8xf32, #tpu.memory_space<vmem>>, vector<1x4x16x8xf32>
      %16 = vector.shape_cast %15 : vector<1x4x16x8xf32> to vector<4x16x8xf32>
      %17 = vector.shape_cast %14 : vector<4x16x8xf32> to vector<1x4x16x8xf32>
      tpu.vector_store %arg6[%c0_9, %c0_10, %c0_11, %c0_12], %17 {strides = array<i32>} : memref<1x4x16x8xf32, #tpu.memory_space<vmem>>, vector<1x4x16x8xf32>,
    } else {
    }
    return
  }
  func.func @transform_0(%arg0: i32, %arg1: i32, %arg2: i32) -> (i32, i32, i32, i32) {
    %c0_i32 = arith.constant 0 : i32
    %c0_i32_0 = arith.constant 0 : i32
    %c0_i32_1 = arith.constant 0 : i32
    return %arg0, %c0_i32, %arg1, %c0_i32_0 : i32, i32, i32, i32
  }
  func.func @transform_1(%arg0: i32, %arg1: i32, %arg2: i32) -> (i32, i32, i32, i32) {
    %c0_i32 = arith.constant 0 : i32
    %0 = arith.minsi %arg2, %c0_i32 : i32
    %c0_i32_0 = arith.constant 0 : i32
    %c0_i32_1 = arith.constant 0 : i32
    %c0_i32_2 = arith.constant 0 : i32
    return %arg0, %c0_i32_0, %0, %c0_i32_1 : i32, i32, i32, i32
  }
  func.func @transform_2(%arg0: i32, %arg1: i32, %arg2: i32) -> (i32, i32, i32, i32) {
    %c0_i32 = arith.constant 0 : i32
    %0 = arith.minsi %arg2, %c0_i32 : i32
    %c0_i32_0 = arith.constant 0 : i32
    %c0_i32_1 = arith.constant 0 : i32
    %c0_i32_2 = arith.constant 0 : i32
    return %arg0, %c0_i32_0, %0, %c0_i32_1 : i32, i32, i32, i32
  }
  func.func @transform_3(%arg0: i32, %arg1: i32, %arg2: i32) -> (i32, i32, i32, i32) {
    %c0_i32 = arith.constant 0 : i32
    %c0_i32_0 = arith.constant 0 : i32
    %c0_i32_1 = arith.constant 0 : i32
    return %arg0, %c0_i32, %arg1, %c0_i32_0 : i32, i32, i32, i32
  }
}

</mosaic_0001>

<bundles_post_ra>
// kernel: tpu_custom_call.1
= control target key start
LH: loop header
LB: loop body
LE: loop exit
PB: predicated region body
PF: predicated region fallthrough
CT: control target
= control target key end

     0   :  { %s1542_s12 = smov 0   ;;  %s1544_s13 = smov 0   ;;  %s1861_s0 = inlined_call_operand.vmem [shape: bf16[2,4,16,8], index: 0, kind: input, shape index: {}]   ;;  %s1862_s1 = inlined_call_operand.vmem [shape: bf16[2,4,16,8], index: 1, kind: input, shape index: {}]   ;;  %s1863_s2 = inlined_call_operand.vmem [shape: bf16[2,4,16,8], index: 2, kind: input, shape index: {}]   ;;  %s1864_s3 = inlined_call_operand.vmem [shape: f32[2,4,16,8], index: 3, kind: output, shape index: {}]  }
   0x1   :  { %s1546_s14 = smov 0  }
   0x2 LB: > { %s32_s15 = sadd.s32 1, %s1512_s13  ;;  %p1305_p0 = scmp.ge.s32.totalorder %s1516_s14, 1  ;;  %s1516_s14 = sphi %s1546_s14, %s13_s14   ;;  %s1512_s13 = sphi %s1544_s13, %s1866_s13   ;;  %s1508_s12 = sphi %s1542_s12, %s1865_s12  }
   0x3   : > { %p34_p1 = scmp.ge.s32.totalorder %s32_s15, 2  ;;  %p215_p2 = scmp.lt.s32.totalorder %s1516_s14, 3 }
   0x5   : > { %s1868_s15 = smov (%p34_p1, %s32_s15), 0  ;;  %p216_p3 = pnand %p1305_p0, %p215_p2 }
   0x6   : > { %p270_p4 = scmp.lt.s32.totalorder (!%p216_p3), %s1508_s12, 1  ;;  %vm339_vm0 = vcmask (!%p216_p3), 64512   ;;  %v1518_v0 = vmov (!%p216_p3), 0.0   ;;  %vm1519_vm1 = vmmov (!%p216_p3), 0   ;;  %vm322_vm2 = vcmask (!%p216_p3), 7168  }
   0x7   : > { %219 = sbr.rel (%p216_p3) target bundleno = 846 (0x34e), region = 32  ;;  %1356 = vmatprep.subr.bf16.mxu0 (!%p216_p3), %v1518_v0  ;;  %1362 = vmatprep.subr.bf16.mxu1 (!%p216_p3), %v1518_v0  ;;  %340 = vst.msk [vmem:[#allocation4] sm:$0xff] (!%p216_p3), %vm339_vm0, %v1518_v0  ;;  %341 = vst.msk [vmem:[#allocation4 + $0x8] sm:$0xff] (!%p216_p3), %vm339_vm0, %v1518_v0  ;;  %v1520_v13 = vmov (!%p216_p3), -inf   ;;  %v606_v14 = vlaneseq (!%p216_p3)  ;;  %vm629_vm4 = vcmask (!%p216_p3), 130048   ;;  %v1521_v48 = vmov (!%p216_p3), 0  }
   0x8   : > { %342 = vst.msk [vmem:[#allocation4 + $0x10] sm:$0xff] (!%p216_p3), %vm339_vm0, %v1518_v0  ;;  %343 = vst.msk [vmem:[#allocation4 + $0x18] sm:$0xff] (!%p216_p3), %vm339_vm0, %v1518_v0  ;;  %1358 = vmatprep.mubr.msk.bf16.mxu0 (!%p216_p3), %vm1519_vm1, %v1518_v0  ;;  %1364 = vmatprep.mubr.msk.bf16.mxu1 (!%p216_p3), %vm1519_vm1, %v1518_v0 }
   0x9   : > { %344 = vst.msk [vmem:[#allocation4 + $0x20] sm:$0xff] (!%p216_p3), %vm339_vm0, %v1518_v0  ;;  %345 = vst.msk [vmem:[#allocation4 + $0x28] sm:$0xff] (!%p216_p3), %vm339_vm0, %v1518_v0  ;;  %v607_v15 = vand.u32 (!%p216_p3), 127, %v606_v14  ;;  %1433 = vset.pattern.permute.xlu1 (!%p216_p3), %v1521_v48  ;;  %1432 = vset.pattern.permute.xlu0 (!%p216_p3), %v1521_v48 }
   0xa   : > { %346 = vst.msk [vmem:[#allocation4 + $0x30] sm:$0xff] (!%p216_p3), %vm339_vm0, %v1518_v0  ;;  %347 = vst.msk [vmem:[#allocation4 + $0x38] sm:$0xff] (!%p216_p3), %vm339_vm0, %v1518_v0 }
   0xb   : > { %325 = vst.msk [vmem:[#allocation2 + $0x10] sm:$0xff] (!%p216_p3), %vm322_vm2, %v1520_v13  ;;  %323 = vst.msk [vmem:[#allocation2] sm:$0xff] (!%p216_p3), %vm322_vm2, %v1520_v13  ;;  %vm610_vm3 = vcmp.ge.s32.totalorder (!%p216_p3), %v607_v15, 8 }
   0xc   : > { %324 = vst.msk [vmem:[#allocation2 + $0x8] sm:$0xff] (!%p216_p3), %vm322_vm2, %v1520_v13  ;;  %326 = vst.msk [vmem:[#allocation2 + $0x18] sm:$0xff] (!%p216_p3), %vm322_vm2, %v1520_v13 }
   0xd   : > { %327 = vst.msk [vmem:[#allocation2 + $0x20] sm:$0xff] (!%p216_p3), %vm322_vm2, %v1520_v13  ;;  %328 = vst.msk [vmem:[#allocation2 + $0x28] sm:$0xff] (!%p216_p3), %vm322_vm2, %v1520_v13 }
   0xe   : > { %s1870_s12 = smov (!%p270_p4, %s1508_s12), 1  ;;  %329 = vst.msk [vmem:[#allocation2 + $0x30] sm:$0xff] %vm322_vm2, %v1520_v13  ;;  %330 = vst.msk [vmem:[#allocation2 + $0x38] sm:$0xff] %vm322_vm2, %v1520_v13 }
   0xf   : > { %s1336_s16 = sshll.u32 %s1870_s12, 5  ;;  %331 = vst.msk [vmem:[#allocation3] sm:$0xff] %vm322_vm2, %v1518_v0  ;;  %332 = vst.msk [vmem:[#allocation3 + $0x8] sm:$0xff] %vm322_vm2, %v1518_v0  ;;  %s1339_s26 = sshll.u32 %s1870_s12, 6 }
  0x10   : > { %s289_s19 = scalar_lea.vmem %s1862_s1, %s1336_s16  ;;  %s277_s22 = scalar_lea.vmem %s1861_s0, %s1336_s16  ;;  %333 = vst.msk [vmem:[#allocation3 + $0x10] sm:$0xff] %vm322_vm2, %v1518_v0  ;;  %334 = vst.msk [vmem:[#allocation3 + $0x18] sm:$0xff] %vm322_vm2, %v1518_v0 }
  0x11   : > { %v1434_v1 = vld [vmem:[%s289_s19] sm:$0xff]   ;;  %v1435_v2 = vld [vmem:[%s289_s19 + $0x8] sm:$0xff]   ;;  %v1438_v6 = vld [vmem:[%s289_s19 + $0x10] sm:$0xff]   ;;  %s1598_s25 = scalar_lea.vmem %s1863_s2, %s1336_s16  ;;  %335 = vst.msk [vmem:[#allocation3 + $0x20] sm:$0xff] %vm322_vm2, %v1518_v0  ;;  %s1834_s29 = scalar_lea.vmem %s1864_s3, %s1339_s26 }
  0x12   : > { %v392_v3 = vsel %vm339_vm0, %v1434_v1, 0  ;;  %v449_v4 = vsel %vm339_vm0, %v1435_v2, 0  ;;  %v1436_v5 = vld [vmem:[%s277_s22] sm:$0xff]   ;;  %v1439_v7 = vld [vmem:[%s289_s19 + $0x18] sm:$0xff]   ;;  %v1437_v8 = vld [vmem:[%s277_s22 + $0x8] sm:$0xff]   ;;  %v506_v9 = vsel %vm339_vm0, %v1438_v6, 0 }
  0x13   : > { %1357 = vmatpush3.bf16.xpose.msra.mxu0 %v392_v3  ;;  %1363 = vmatpush3.bf16.xpose.msra.mxu1 %v449_v4  ;;  %v563_v10 = vsel %vm339_vm0, %v1439_v7, 0  ;;  %v1440_v11 = vld [vmem:[%s277_s22 + $0x10] sm:$0xff]   ;;  %v1441_v12 = vld [vmem:[%s277_s22 + $0x18] sm:$0xff]   ;;  %336 = vst.msk [vmem:[#allocation3 + $0x28] sm:$0xff] %vm322_vm2, %v1518_v0  ;;  %337 = vst.msk [vmem:[#allocation3 + $0x30] sm:$0xff] %vm322_vm2, %v1518_v0 }
  0x14   : > { %1368 = vmatprep.subr.bf16.mxu0 %v1518_v0  ;;  %1374 = vmatprep.subr.bf16.mxu1 %v1518_v0  ;;  %338 = vst.msk [vmem:[#allocation3 + $0x38] sm:$0xff] %vm322_vm2, %v1518_v0  ;;  %v1680_v49 = vld [vmem:[#allocation2] sm:$0xff]  ;;  %v1682_v50 = vld [vmem:[#allocation2 + $0x10] sm:$0xff]  ;;  %v1690_v55 = vld [vmem:[#allocation2 + $0x8] sm:$0xff] }
  0x15   : > { %v1697_v57 = vld [vmem:[#allocation2 + $0x18] sm:$0xff]  ;;  %v1710_v63 = vld [vmem:[#allocation2 + $0x20] sm:$0xff]  ;;  %v1721_v4 = vld [vmem:[#allocation2 + $0x28] sm:$0xff] }
  0x16   : > { %v1726_v7 = vld [vmem:[#allocation2 + $0x30] sm:$0xff] }
  0x1a   : > { %1359 = vmatmul.mubr.msk.bf16.vlgmr.msra.gmra.mrb[0].mxu0 %vm339_vm0, %v1436_v5  ;;  %1365 = vmatmul.mubr.msk.bf16.vlgmr.msra.gmra.mrb[0].mxu1 %vm339_vm0, %v1437_v8 }
  0x1b   : > { %1369 = vmatpush3.bf16.xpose.msra.mxu0 %v506_v9  ;;  %1375 = vmatpush3.bf16.xpose.msra.mxu1 %v563_v10 }
  0x1c   : > { %1370 = vmatprep.mubr.msk.bf16.mxu0 %vm1519_vm1, %v1518_v0  ;;  %1376 = vmatprep.mubr.msk.bf16.mxu1 %vm1519_vm1, %v1518_v0 }
  0x1d   : > { %1380 = vmatprep.subr.bf16.mxu0 %v1518_v0  ;;  %1386 = vmatprep.subr.bf16.mxu1 %v1518_v0 }
  0x22   : > { %1371 = vmatmul.mubr.msk.bf16.vlgmr.msra.gmra.mrb[4].mxu0 %vm339_vm0, %v1440_v11  ;;  %1377 = vmatmul.mubr.msk.bf16.vlgmr.msra.gmra.mrb[4].mxu1 %vm339_vm0, %v1441_v12  ;;  %v1736_v11 = vld [vmem:[#allocation2 + $0x38] sm:$0xff] }
  0x23   : > { %1382 = vmatprep.mubr.msk.bf16.mxu0 %vm1519_vm1, %v1518_v0  ;;  %1388 = vmatprep.mubr.msk.bf16.mxu1 %vm1519_vm1, %v1518_v0 }
  0xed   : > { %v428_v16 = vpop.f32.mrb[0].mxu0  ;;  %v485_v18 = vpop.f32.mrb[0].mxu1 }
  0xee   : > { %v1641_v17 = vsel %vm610_vm3, -1e+30, %v428_v16  ;;  %v1360_v19 = vpop.f32.mrb[1].mxu0  ;;  %v1644_v20 = vsel %vm610_vm3, -1e+30, %v485_v18  ;;  %v1366_v21 = vpop.f32.mrb[1].mxu1 }
  0xef   : > { %v431_v22 = vpop.f32.mrb[2].mxu0  ;;  %v630_v23 = vsel %vm629_vm4, %v1641_v17, -inf  ;;  %v488_v25 = vpop.f32.mrb[2].mxu1  ;;  %v636_v26 = vsel %vm629_vm4, %v1644_v20, -inf  ;;  %v1442_v19 = vld [vmem:[%s1598_s25] sm:$0xff]   ;;  %v1443_v21 = vld [vmem:[%s1598_s25 + $0x8] sm:$0xff]  }
  0xf0   : > { %v1649_v24 = vsel %vm610_vm3, -1e+30, %v431_v22  ;;  %631 = vmax.xlane.f32.xlu0 %v630_v23  ;;  %v1361_v27 = vpop.f32.mrb[3].mxu0  ;;  %v1654_v28 = vsel %vm610_vm3, -1e+30, %v488_v25  ;;  %637 = vmax.xlane.f32.xlu1 %v636_v26  ;;  %v1367_v29 = vpop.f32.mrb[3].mxu1 }
  0xf1   : > { %v633_v30 = vsel %vm629_vm4, %v1649_v24, -inf  ;;  %v639_v31 = vsel %vm629_vm4, %v1654_v28, -inf  ;;  %1381 = vmatpush3.bf16.msra.mxu0 %v1442_v19  ;;  %1387 = vmatpush3.bf16.msra.mxu1 %v1443_v21 }
  0xf2   : > { %1392 = vmatprep.subr.bf16.mxu0 %v1518_v0  ;;  %1398 = vmatprep.subr.bf16.mxu1 %v1518_v0 }
  0xf4   : > { %634 = vmax.xlane.f32.xlu0 %v633_v30  ;;  %640 = vmax.xlane.f32.xlu1 %v639_v31 }
  0xf5   : > { %v542_v32 = vpop.f32.mrb[4].mxu0  ;;  %v599_v35 = vpop.f32.mrb[4].mxu1 }
  0xf6   : > { %v1661_v33 = vsel %vm610_vm3, -1e+30, %v542_v32  ;;  %v1372_v34 = vpop.f32.mrb[5].mxu0  ;;  %v1664_v37 = vsel %vm610_vm3, -1e+30, %v599_v35  ;;  %v1378_v38 = vpop.f32.mrb[5].mxu1 }
  0xf7   : > { %v545_v36 = vpop.f32.mrb[6].mxu0  ;;  %v642_v39 = vsel %vm629_vm4, %v1661_v33, -inf  ;;  %v602_v42 = vpop.f32.mrb[6].mxu1  ;;  %v648_v46 = vsel %vm629_vm4, %v1664_v37, -inf }
  0xf8   : > { %v1669_v40 = vsel %vm610_vm3, -1e+30, %v545_v36  ;;  %v1373_v41 = vpop.f32.mrb[7].mxu0  ;;  %643 = vmax.xlane.f32.xlu0 %v642_v39  ;;  %v1672_v43 = vsel %vm610_vm3, -1e+30, %v602_v42  ;;  %v1379_v45 = vpop.f32.mrb[7].mxu1 }
  0xf9   : > { %v645_v44 = vsel %vm629_vm4, %v1669_v40, -inf  ;;  %v651_v47 = vsel %vm629_vm4, %v1672_v43, -inf }
  0xfa   : > { %646 = vmax.xlane.f32.xlu1 %v645_v44 }
  0xfc   : > { %649 = vmax.xlane.f32.xlu0 %v648_v46 }
  0xfe   : > { %652 = vmax.xlane.f32.xlu1 %v651_v47  ;;  %v1444_v47 = vld [vmem:[%s1598_s25 + $0x10] sm:$0xff]  }
 0x17d   : > { %v632_v51 = vpop.xlane.xlu0 %631  ;;  %v638_v52 = vpop.xlane.xlu1 %637 }
 0x17e   : > { %v1685_v53 = vmax.f32 %v1680_v49, %v632_v51  ;;  %v1688_v54 = vmax.f32 %v1682_v50, %v638_v52 }
 0x180   : > { %v662_v56 = vsub.f32 %v1680_v49, %v1685_v53  ;;  %1083 = vst.msk [vmem:[#allocation2] sm:$0xff] %vm322_vm2, %v1685_v53  ;;  %688 = vperm.xlu0 %1432, %v1685_v53   ;;  %v664_v58 = vsub.f32 %v1682_v50, %v1688_v54  ;;  %1085 = vst.msk [vmem:[#allocation2 + $0x10] sm:$0xff] %vm322_vm2, %v1688_v54  ;;  %698 = vperm.xlu1 %1433, %v1688_v54  }
 0x181   : > { %v635_v59 = vpop.xlane.xlu0 %634  ;;  %v641_v60 = vpop.xlane.xlu1 %640 }
 0x182   : > { %v1705_v61 = vmax.f32 %v1690_v55, %v635_v59  ;;  %v1708_v62 = vmax.f32 %v1697_v57, %v641_v60  ;;  %v674_v49 = vmul.f32 1.442695, %v664_v58 }
 0x184   : > { %v663_v1 = vsub.f32 %v1690_v55, %v1705_v61  ;;  %1084 = vst.msk [vmem:[#allocation2 + $0x8] sm:$0xff] %vm322_vm2, %v1705_v61  ;;  %v665_v2 = vsub.f32 %v1697_v57, %v1708_v62  ;;  %1086 = vst.msk [vmem:[#allocation2 + $0x18] sm:$0xff] %vm322_vm2, %v1708_v62  ;;  %693 = vperm.xlu1 %1433, %v1705_v61  }
 0x185   : > { %v644_v3 = vpop.xlane.xlu0 %643 }
 0x186   : > { %v1724_v5 = vmax.f32 %v1710_v63, %v644_v3 }
 0x187   : > { %v647_v6 = vpop.xlane.xlu1 %646 }
 0x188   : > { %v666_v8 = vsub.f32 %v1710_v63, %v1724_v5  ;;  %1087 = vst.msk [vmem:[#allocation2 + $0x20] sm:$0xff] %vm322_vm2, %v1724_v5  ;;  %v1733_v9 = vmax.f32 %v1721_v4, %v647_v6  ;;  %703 = vperm.xlu1 %1433, %v1708_v62  }
 0x189   : > { %v650_v10 = vpop.xlane.xlu0 %649 }
 0x18a   : > { %v667_v12 = vsub.f32 %v1721_v4, %v1733_v9  ;;  %1088 = vst.msk [vmem:[#allocation2 + $0x28] sm:$0xff] %vm322_vm2, %v1733_v9  ;;  %v1743_v13 = vmax.f32 %v1726_v7, %v650_v10  ;;  %v678_v55 = vmul.f32 1.442695, %v666_v8  ;;  %v750_v4 = vld [vmem:[#allocation3] sm:$0xff] }
 0x18b   : > { %v653_v14 = vpop.xlane.xlu1 %652 }
 0x18c   : > { %v668_v15 = vsub.f32 %v1726_v7, %v1743_v13  ;;  %1089 = vst.msk [vmem:[#allocation2 + $0x30] sm:$0xff] %vm322_vm2, %v1743_v13  ;;  %v1750_v16 = vmax.f32 %v1736_v11, %v653_v14  ;;  %708 = vperm.xlu1 %1433, %v1724_v5   ;;  %v680_v53 = vmul.f32 1.442695, %v667_v12  ;;  %v752_v5 = vld [vmem:[#allocation3 + $0x10] sm:$0xff] }
 0x18e   : > { %v669_v18 = vsub.f32 %v1736_v11, %v1750_v16  ;;  %1090 = vst.msk [vmem:[#allocation2 + $0x38] sm:$0xff] %vm322_vm2, %v1750_v16  ;;  %v682_v50 = vmul.f32 1.442695, %v668_v15 }
 0x190   : > { %718 = vperm.xlu1 %1433, %v1743_v13   ;;  %v751_v13 = vld [vmem:[#allocation3 + $0x8] sm:$0xff] }
 0x194   : > { %713 = vperm.xlu1 %1433, %v1733_v9  }
 0x198   : > { %723 = vperm.xlu1 %1433, %v1750_v16  }
 0x1ff   : > { %v689_v22 = vpop.permute.xlu0 %688  ;;  %v699_v25 = vpop.permute.xlu1 %698 }
 0x200   : > { %v726_v23 = vsub.f32 %v1641_v17, %v689_v22  ;;  %v728_v26 = vsub.f32 %v1644_v20, %v699_v25 }
 0x202   : > { %v734_v27 = vmul.f32 1.442695, %v726_v23  ;;  %v738_v29 = vmul.f32 1.442695, %v728_v26 }
 0x203   : > { %v694_v30 = vpop.permute.xlu1 %693 }
 0x204   : > { %1446 = vpow2.f32 %v734_v27  ;;  %v727_v31 = vsub.f32 %v1649_v24, %v694_v30 }
 0x205   : > { %1448 = vpow2.f32 %v738_v29 }
 0x206   : > { %v736_v32 = vmul.f32 1.442695, %v727_v31  ;;  %v672_v31 = vmul.f32 1.442695, %v663_v1 }
 0x207   : > { %v704_v34 = vpop.permute.xlu1 %703 }
 0x208   : > { %1450 = vpow2.f32 %v736_v32  ;;  %v729_v35 = vsub.f32 %v1654_v28, %v704_v34  ;;  %v676_v32 = vmul.f32 1.442695, %v665_v2  ;;  %v753_v34 = vld [vmem:[#allocation3 + $0x18] sm:$0xff] }
 0x20a   : > { %v740_v36 = vmul.f32 1.442695, %v729_v35 }
 0x20b   : > { %v709_v38 = vpop.permute.xlu1 %708 }
 0x20c   : > { %1452 = vpow2.f32 %v740_v36  ;;  %v730_v17 = vsub.f32 %v1661_v33, %v709_v38 }
 0x20e   : > { %v1447_v39 = vpop.eup %1446  ;;  %v742_v41 = vmul.f32 1.442695, %v730_v17  ;;  %v754_v17 = vld [vmem:[#allocation3 + $0x20] sm:$0xff] }
 0x20f   : > { %v1449_v20 = vpop.eup %1448  ;;  %v766_v42 = vsel %vm629_vm4, %v1447_v39, 0.0  ;;  %v719_v44 = vpop.permute.xlu1 %718 }
 0x210   : > { %767 = vadd.xlane.f32.xlu1 %v766_v42  ;;  %v772_v24 = vsel %vm629_vm4, %v1449_v20, 0.0  ;;  %1454 = vpow2.f32 %v742_v41  ;;  %v732_v45 = vsub.f32 %v1664_v37, %v719_v44  ;;  %v1445_v37 = vld [vmem:[%s1598_s25 + $0x18] sm:$0xff]  }
 0x211   : > { %773 = vadd.xlane.f32.xlu0 %v772_v24  ;;  %v756_v24 = vld [vmem:[#allocation3 + $0x30] sm:$0xff] }
 0x212   : > { %v1451_v28 = vpop.eup %1450  ;;  %v746_v46 = vmul.f32 1.442695, %v732_v45 }
 0x213   : > { %v714_v48 = vpop.permute.xlu1 %713  ;;  %v769_v33 = vsel %vm629_vm4, %v1451_v28, 0.0  ;;  %v863_v51 = vpack.c.bf16 %v1451_v28, %v1447_v39 }
 0x214   : > { %1456 = vpow2.f32 %v746_v46  ;;  %v731_v52 = vsub.f32 %v1669_v40, %v714_v48  ;;  %v755_v48 = vld [vmem:[#allocation3 + $0x28] sm:$0xff] }
 0x215   : > { %770 = vadd.xlane.f32.xlu0 %v769_v33  ;;  %1383 = vmatmul.mubr.msk.bf16.vlgmr.msra.gmra.mrb[8].mxu0 %vm629_vm4, %v863_v51 }
 0x216   : > { %v1453_v59 = vpop.eup %1452  ;;  %v744_v60 = vmul.f32 1.442695, %v731_v52  ;;  %1393 = vmatpush3.bf16.msra.mxu0 %v1444_v47  ;;  %1394 = vmatprep.mubr.msk.bf16.mxu0 %vm1519_vm1, %v1518_v0 }
 0x217   : > { %v724_v3 = vpop.permute.xlu1 %723  ;;  %v775_v6 = vsel %vm629_vm4, %v1453_v59, 0.0  ;;  %v864_v10 = vpack.c.bf16 %v1453_v59, %v1449_v20 }
 0x218   : > { %1458 = vpow2.f32 %v744_v60  ;;  %v733_v14 = vsub.f32 %v1672_v43, %v724_v3  ;;  %776 = vadd.xlane.f32.xlu1 %v775_v6 }
 0x219   : > { %1389 = vmatmul.mubr.msk.bf16.vlgmr.msra.gmra.mrb[8].mxu1 %vm629_vm4, %v864_v10 }
 0x21a   : > { %v1455_v40 = vpop.eup %1454  ;;  %v748_v19 = vmul.f32 1.442695, %v733_v14  ;;  %1399 = vmatpush3.bf16.msra.mxu1 %v1445_v37  ;;  %1400 = vmatprep.mubr.msk.bf16.mxu1 %vm1519_vm1, %v1518_v0  ;;  %v670_v0 = vmul.f32 1.442695, %v662_v56  ;;  %v684_v56 = vmul.f32 1.442695, %v669_v18 }
 0x21b   : > { %v778_v21 = vsel %vm629_vm4, %v1455_v40, 0.0  ;;  %v757_v37 = vld [vmem:[#allocation3 + $0x38] sm:$0xff] }
 0x21c   : > { %1460 = vpow2.f32 %v748_v19  ;;  %779 = vadd.xlane.f32.xlu0 %v778_v21 }
 0x21d   : > { %1462 = vpow2.f32 %v670_v0 }
 0x21e   : > { %v1457_v22 = vpop.eup %1456  ;;  %1464 = vpow2.f32 %v672_v31  ;;  %v807_v31 = vld [vmem:[#allocation4] sm:$0xff] }
 0x21f   : > { %v784_v23 = vsel %vm629_vm4, %v1457_v22, 0.0  ;;  %1466 = vpow2.f32 %v676_v32 }
 0x220   : > { %785 = vadd.xlane.f32.xlu0 %v784_v23  ;;  %1468 = vpow2.f32 %v674_v49  ;;  %v808_v49 = vld [vmem:[#allocation4 + $0x8] sm:$0xff] }
 0x221   : > { %1470 = vpow2.f32 %v680_v53 }
 0x222   : > { %v1459_v25 = vpop.eup %1458  ;;  %1472 = vpow2.f32 %v678_v55  ;;  %v809_v55 = vld [vmem:[#allocation4 + $0x10] sm:$0xff] }
 0x223   : > { %v781_v43 = vsel %vm629_vm4, %v1459_v25, 0.0  ;;  %v865_v26 = vpack.c.bf16 %v1459_v25, %v1455_v40  ;;  %1474 = vpow2.f32 %v684_v56 }
 0x224   : > { %782 = vadd.xlane.f32.xlu1 %v781_v43  ;;  %1476 = vpow2.f32 %v682_v50 }
 0x225   : > { %1395 = vmatmul.mubr.msk.bf16.vlgmr.msra.gmra.mrb[12].mxu0 %vm629_vm4, %v865_v26 }
 0x226   : > { %v1461_v27 = vpop.eup %1460 }
 0x227   : > { %v787_v29 = vsel %vm629_vm4, %v1461_v27, 0.0  ;;  %v866_v30 = vpack.c.bf16 %v1461_v27, %v1457_v22  ;;  %v1463_v57 = vpop.eup %1462 }
 0x228   : > { %788 = vadd.xlane.f32.xlu1 %v787_v29  ;;  %v1465_v54 = vpop.eup %1464  ;;  %v758_v7 = vmul.f32 %v1463_v57, %v750_v4 }
 0x229   : > { %1401 = vmatmul.mubr.msk.bf16.vlgmr.msra.gmra.mrb[12].mxu1 %vm629_vm4, %v866_v30  ;;  %v1467_v58 = vpop.eup %1466  ;;  %v759_v16 = vmul.f32 %v1465_v54, %v751_v13 }
 0x22a   : > { %v1469_v61 = vpop.eup %1468  ;;  %v761_v36 = vmul.f32 %v1467_v58, %v753_v34  ;;  %v812_v34 = vld [vmem:[#allocation4 + $0x28] sm:$0xff] }
 0x22b   : > { %v1471_v62 = vpop.eup %1470  ;;  %v760_v8 = vmul.f32 %v1469_v61, %v752_v5 }
 0x22c   : > { %v1473_v63 = vpop.eup %1472  ;;  %v763_v52 = vmul.f32 %v1471_v62, %v755_v48 }
 0x22d   : > { %v1475_v1 = vpop.eup %1474  ;;  %v762_v41 = vmul.f32 %v1473_v63, %v754_v17 }
 0x22e   : > { %v1477_v2 = vpop.eup %1476  ;;  %v765_v10 = vmul.f32 %v1475_v1, %v757_v37 }
 0x22f   : > { %v764_v46 = vmul.f32 %v1477_v2, %v756_v24 }
 0x236   : > { %817 = vperm.xlu0 %1432, %v1463_v57  }
 0x239   : > { %822 = vperm.xlu1 %1433, %v1465_v54  }
 0x23a   : > { %832 = vperm.xlu0 %1432, %v1467_v58  }
 0x23d   : > { %827 = vperm.xlu1 %1433, %v1469_v61   ;;  %v810_v61 = vld [vmem:[#allocation4 + $0x18] sm:$0xff] }
 0x23e   : > { %842 = vperm.xlu0 %1432, %v1471_v62  }
 0x241   : > { %837 = vperm.xlu1 %1433, %v1473_v63  }
 0x242   : > { %852 = vperm.xlu0 %1432, %v1475_v1  }
 0x245   : > { %847 = vperm.xlu1 %1433, %v1477_v2  }
 0x29d   : > { %v768_v9 = vpop.xlane.xlu1 %767 }
 0x29e   : > { %v774_v11 = vpop.xlane.xlu0 %773  ;;  %v790_v12 = vadd.f32 %v768_v9, %v758_v7 }
 0x29f   : > { %v792_v15 = vadd.f32 %v774_v11, %v760_v8 }
 0x2a0   : > { %799 = vst.msk [vmem:[#allocation3] sm:$0xff] %vm322_vm2, %v790_v12 }
 0x2a1   : > { %801 = vst.msk [vmem:[#allocation3 + $0x10] sm:$0xff] %vm322_vm2, %v792_v15 }
 0x2a2   : > { %v771_v18 = vpop.xlane.xlu0 %770 }
 0x2a3   : > { %v791_v35 = vadd.f32 %v771_v18, %v759_v16  ;;  %v811_v18 = vld [vmem:[#allocation4 + $0x20] sm:$0xff] }
 0x2a5   : > { %800 = vst.msk [vmem:[#allocation3 + $0x8] sm:$0xff] %vm322_vm2, %v791_v35  ;;  %v777_v38 = vpop.xlane.xlu1 %776 }
 0x2a6   : > { %v793_v39 = vadd.f32 %v777_v38, %v761_v36  ;;  %v813_v36 = vld [vmem:[#allocation4 + $0x30] sm:$0xff] }
 0x2a7   : > { %v1102_v20 = vld [vmem:[#allocation3] sm:$0xff] }
 0x2a8   : > { %1478 = vrcp.f32 %v1102_v20  ;;  %802 = vst.msk [vmem:[#allocation3 + $0x18] sm:$0xff] %vm322_vm2, %v793_v39  ;;  %v1104_v42 = vld [vmem:[#allocation3 + $0x10] sm:$0xff] }
 0x2a9   : > { %v780_v44 = vpop.xlane.xlu0 %779  ;;  %1480 = vrcp.f32 %v1104_v42  ;;  %v814_v42 = vld [vmem:[#allocation4 + $0x38] sm:$0xff] }
 0x2aa   : > { %v794_v45 = vadd.f32 %v780_v44, %v762_v41 }
 0x2ac   : > { %v1103_v28 = vld [vmem:[#allocation3 + $0x8] sm:$0xff]  ;;  %803 = vst.msk [vmem:[#allocation3 + $0x20] sm:$0xff] %vm322_vm2, %v794_v45 }
 0x2ad   : > { %1482 = vrcp.f32 %v1103_v28  ;;  %v786_v47 = vpop.xlane.xlu0 %785 }
 0x2ae   : > { %v796_v33 = vadd.f32 %v786_v47, %v764_v46 }
 0x2af   : > { %v1105_v51 = vld [vmem:[#allocation3 + $0x18] sm:$0xff] }
 0x2b0   : > { %805 = vst.msk [vmem:[#allocation3 + $0x30] sm:$0xff] %vm322_vm2, %v796_v33  ;;  %1484 = vrcp.f32 %v1105_v51 }
 0x2b1   : > { %v783_v60 = vpop.xlane.xlu1 %782 }
 0x2b2   : > { %v1479_v59 = vpop.eup %1478  ;;  %v795_v3 = vadd.f32 %v783_v60, %v763_v52 }
 0x2b3   : > { %1120 = vperm.xlu1 %1433, %v1479_v59   ;;  %v1106_v6 = vld [vmem:[#allocation3 + $0x20] sm:$0xff]  ;;  %v1481_v14 = vpop.eup %1480 }
 0x2b4   : > { %804 = vst.msk [vmem:[#allocation3 + $0x28] sm:$0xff] %vm322_vm2, %v795_v3  ;;  %1486 = vrcp.f32 %v1106_v6 }
 0x2b5   : > { %v789_v40 = vpop.xlane.xlu1 %788  ;;  %v818_v32 = vpop.permute.xlu0 %817 }
 0x2b6   : > { %v797_v21 = vadd.f32 %v789_v40, %v765_v10  ;;  %v855_v53 = vmul.f32 %v818_v32, %v807_v31 }
 0x2b7   : > { %v1483_v19 = vpop.eup %1482  ;;  %1130 = vperm.xlu1 %1433, %v1481_v14   ;;  %v1108_v22 = vld [vmem:[#allocation3 + $0x30] sm:$0xff] }
 0x2b8   : > { %1125 = vperm.xlu0 %1432, %v1483_v19   ;;  %806 = vst.msk [vmem:[#allocation3 + $0x38] sm:$0xff] %vm322_vm2, %v797_v21  ;;  %1488 = vrcp.f32 %v1108_v22 }
 0x2b9   : > { %v823_v30 = vpop.permute.xlu1 %822  ;;  %v833_v62 = vpop.permute.xlu0 %832 }
 0x2ba   : > { %v1485_v23 = vpop.eup %1484  ;;  %v856_v50 = vmul.f32 %v823_v30, %v808_v49  ;;  %v858_v7 = vmul.f32 %v833_v62, %v810_v61 }
 0x2bb   : > { %v1107_v25 = vld [vmem:[#allocation3 + $0x28] sm:$0xff] }
 0x2bc   : > { %1135 = vperm.xlu0 %1432, %v1485_v23   ;;  %1490 = vrcp.f32 %v1107_v25 }
 0x2bd   : > { %v828_v56 = vpop.permute.xlu1 %827  ;;  %v843_v16 = vpop.permute.xlu0 %842 }
 0x2be   : > { %v1487_v43 = vpop.eup %1486  ;;  %v857_v1 = vmul.f32 %v828_v56, %v809_v55  ;;  %v860_v39 = vmul.f32 %v843_v16, %v812_v34 }
 0x2bf   : > { %1140 = vperm.xlu1 %1433, %v1487_v43   ;;  %v1109_v26 = vld [vmem:[#allocation3 + $0x38] sm:$0xff] }
 0x2c0   : > { %1492 = vrcp.f32 %v1109_v26 }
 0x2c1   : > { %v838_v15 = vpop.permute.xlu1 %837  ;;  %v853_v44 = vpop.permute.xlu0 %852 }
 0x2c2   : > { %v1489_v27 = vpop.eup %1488  ;;  %v859_v35 = vmul.f32 %v838_v15, %v811_v18  ;;  %v862_v48 = vmul.f32 %v853_v44, %v814_v42 }
 0x2c3   : > { %1150 = vperm.xlu1 %1433, %v1489_v27  }
 0x2c5   : > { %v848_v38 = vpop.permute.xlu1 %847 }
 0x2c6   : > { %v1491_v0 = vpop.eup %1490  ;;  %v861_v45 = vmul.f32 %v848_v38, %v813_v36 }
 0x2c7   : > { %1145 = vperm.xlu0 %1432, %v1491_v0  }
 0x2ca   : > { %v1493_v29 = vpop.eup %1492 }
 0x2cb   : > { %1155 = vperm.xlu0 %1432, %v1493_v29  }
 0x2e8   : > { %v910_v57 = vpop.f32.mrb[8].mxu0 }
 0x2e9   : > { %v1067_v54 = vadd.f32 %v910_v57, %v855_v53  ;;  %v1384_v58 = vpop.f32.mrb[9].mxu0 }
 0x2ea   : > { %v913_v63 = vpop.f32.mrb[10].mxu0 }
 0x2eb   : > { %1075 = vst.msk [vmem:[#allocation4] sm:$0xff] %vm339_vm0, %v1067_v54  ;;  %v1068_v2 = vadd.f32 %v913_v63, %v856_v50  ;;  %v1385_v4 = vpop.f32.mrb[11].mxu0 }
 0x2ec   : > { %v960_v5 = vpop.f32.mrb[8].mxu1 }
 0x2ed   : > { %1076 = vst.msk [vmem:[#allocation4 + $0x8] sm:$0xff] %vm339_vm0, %v1068_v2  ;;  %v1069_v8 = vadd.f32 %v960_v5, %v857_v1  ;;  %v1390_v9 = vpop.f32.mrb[9].mxu1 }
 0x2ee   : > { %v963_v11 = vpop.f32.mrb[10].mxu1 }
 0x2ef   : > { %1077 = vst.msk [vmem:[#allocation4 + $0x10] sm:$0xff] %vm339_vm0, %v1069_v8  ;;  %v1070_v12 = vadd.f32 %v963_v11, %v858_v7  ;;  %v1391_v13 = vpop.f32.mrb[11].mxu1 }
 0x2f1   : > { %1078 = vst.msk [vmem:[#allocation4 + $0x18] sm:$0xff] %vm339_vm0, %v1070_v12 }
 0x2f2   : > { %v1094_v3 = vld [vmem:[#allocation4] sm:$0xff] }
 0x2f4   : > { %v1095_v19 = vld [vmem:[#allocation4 + $0x8] sm:$0xff] }
 0x2f6   : > { %v1096_v10 = vld [vmem:[#allocation4 + $0x10] sm:$0xff] }
 0x2f8   : > { %v1010_v17 = vpop.f32.mrb[12].mxu0  ;;  %v1097_v23 = vld [vmem:[#allocation4 + $0x18] sm:$0xff] }
 0x2f9   : > { %v1071_v20 = vadd.f32 %v1010_v17, %v859_v35  ;;  %v1396_v41 = vpop.f32.mrb[13].mxu0 }
 0x2fa   : > { %v1013_v24 = vpop.f32.mrb[14].mxu0 }
 0x2fb   : > { %1079 = vst.msk [vmem:[#allocation4 + $0x20] sm:$0xff] %vm339_vm0, %v1071_v20  ;;  %v1072_v28 = vadd.f32 %v1013_v24, %v860_v39  ;;  %v1397_v46 = vpop.f32.mrb[15].mxu0 }
 0x2fc   : > { %v1060_v47 = vpop.f32.mrb[12].mxu1 }
 0x2fd   : > { %1080 = vst.msk [vmem:[#allocation4 + $0x28] sm:$0xff] %vm339_vm0, %v1072_v28  ;;  %v1073_v33 = vadd.f32 %v1060_v47, %v861_v45  ;;  %v1402_v51 = vpop.f32.mrb[13].mxu1 }
 0x2fe   : > { %v1063_v52 = vpop.f32.mrb[14].mxu1 }
 0x2ff   : > { %1081 = vst.msk [vmem:[#allocation4 + $0x30] sm:$0xff] %vm339_vm0, %v1073_v33  ;;  %v1074_v59 = vadd.f32 %v1063_v52, %v862_v48  ;;  %v1403_v60 = vpop.f32.mrb[15].mxu1 }
 0x301   : > { %1082 = vst.msk [vmem:[#allocation4 + $0x38] sm:$0xff] %vm339_vm0, %v1074_v59 }
 0x302   : > { %v1098_v27 = vld [vmem:[#allocation4 + $0x20] sm:$0xff] }
 0x304   : > { %v1099_v49 = vld [vmem:[#allocation4 + $0x28] sm:$0xff] }
 0x306   : > { %v1100_v29 = vld [vmem:[#allocation4 + $0x30] sm:$0xff] }
 0x308   : > { %v1101_v55 = vld [vmem:[#allocation4 + $0x38] sm:$0xff] }
 0x332   : > { %v1121_v37 = vpop.permute.xlu1 %1120 }
 0x333   : > { %v1158_v6 = vmul.f32 %v1121_v37, %v1094_v3 }
 0x335   : > { %1167 = vst.msk [vmem:[%s1834_s29] sm:$0xff] %vm339_vm0, %v1158_v6 }
 0x336   : > { %v1131_v14 = vpop.permute.xlu1 %1130 }
 0x337   : > { %v1126_v40 = vpop.permute.xlu0 %1125  ;;  %v1160_v21 = vmul.f32 %v1131_v14, %v1096_v10 }
 0x338   : > { %v1159_v22 = vmul.f32 %v1126_v40, %v1095_v19 }
 0x339   : > { %1169 = vst.msk [vmem:[%s1834_s29 + $0x10] sm:$0xff] %vm339_vm0, %v1160_v21 }
 0x33a   : > { %1168 = vst.msk [vmem:[%s1834_s29 + $0x8] sm:$0xff] %vm339_vm0, %v1159_v22 }
 0x33b   : > { %v1136_v25 = vpop.permute.xlu0 %1135 }
 0x33c   : > { %v1161_v43 = vmul.f32 %v1136_v25, %v1097_v23 }
 0x33e   : > { %1170 = vst.msk [vmem:[%s1834_s29 + $0x18] sm:$0xff] %vm339_vm0, %v1161_v43  ;;  %v1141_v26 = vpop.permute.xlu1 %1140 }
 0x33f   : > { %v1162_v0 = vmul.f32 %v1141_v26, %v1098_v27 }
 0x341   : > { %1171 = vst.msk [vmem:[%s1834_s29 + $0x20] sm:$0xff] %vm339_vm0, %v1162_v0 }
 0x342   : > { %v1151_v30 = vpop.permute.xlu1 %1150 }
 0x343   : > { %v1164_v31 = vmul.f32 %v1151_v30, %v1100_v29 }
 0x345   : > { %1173 = vst.msk [vmem:[%s1834_s29 + $0x30] sm:$0xff] %vm339_vm0, %v1164_v31 }
 0x346   : > { %v1146_v32 = vpop.permute.xlu0 %1145 }
 0x347   : > { %v1163_v53 = vmul.f32 %v1146_v32, %v1099_v49 }
 0x349   : > { %1172 = vst.msk [vmem:[%s1834_s29 + $0x28] sm:$0xff] %vm339_vm0, %v1163_v53 }
 0x34a   : > { %v1156_v56 = vpop.permute.xlu0 %1155 }
 0x34b   : > { %v1165_v57 = vmul.f32 %v1156_v56, %v1101_v55 }
 0x34d   : > { %1174 = vst.msk [vmem:[%s1834_s29 + $0x38] sm:$0xff] %vm339_vm0, %v1165_v57 }
 0x34e PF: > { %s13_s14 = sadd.s32 1, %s1516_s14   ;;  %s1865_s12 = smov %s1512_s13 }
 0x34f   : > { %p10_p5 = scmp.ge.s32.totalorder %s13_s14, 4   ;;  %s1866_s13 = smov %s1868_s15 }
 0x351   :  { %12 = sbr.rel (!%p10_p5) target bundleno = 2 (0x2), region = 80 }

</bundles_post_ra>
